<compile_context>
chip_gen: v7x
topology: tpu7x:2x2x1
jax: 0.10.0
libtpu: 0.0.40
codegen_flags: <defaults>
</compile_context>

<pallas_src>
import functools

import jax
import jax.numpy as jnp
from jax.experimental import pallas as pl
from jax.experimental.pallas import tpu as pltpu

LANE = 128
SUBLANE = 8


def _round_up(x, m):
    return ((x + m - 1) // m) * m


# ----------------------------------------------------------------------------
# Pallas kernel: whole MLP fused, one batch tile per grid step.
# Ref order: x, [z, W0_z,] W0, b0, W1, b1, ..., out
# ----------------------------------------------------------------------------
def _mlp_kernel(*refs, n_layers, has_z):
    x_ref = refs[0]
    o_ref = refs[-1]
    if has_z:
        z_ref, w0z_ref = refs[1], refs[2]
        wb = refs[3:-1]
    else:
        z_ref = w0z_ref = None
        wb = refs[1:-1]

    h = x_ref[...].astype(jnp.float32)
    for layer in range(n_layers):
        w = wb[2 * layer][...]
        b = wb[2 * layer + 1][...]
        acc = jnp.dot(h.astype(w.dtype), w, preferred_element_type=jnp.float32)
        if layer == 0 and has_z:
            w0z = w0z_ref[...]
            acc = acc + jnp.dot(z_ref[...].astype(w0z.dtype), w0z,
                                preferred_element_type=jnp.float32)
        h = acc + b.astype(jnp.float32)      # bias add in f32 (VPU-safe on v5e)
        if layer < n_layers - 1:             # ReLU on hidden layers only
            h = jnp.maximum(h, 0.0)
    o_ref[...] = h.astype(o_ref.dtype)


def mlp_forward(x, weights, biases, *, z=None, w0_z=None, block_b=1024):
    """Fused MLP forward.

    x:       (B, in_features) float32 (in_features may be < 128)
    weights: W0 (in_features, h_pad), hidden (h_pad, h_pad), last (h_pad, out)
    biases:  (1, width) float32 per layer
    z:       optional (1, z) or (B, z) float32; (1, z) folds into bias0
    w0_z:    (z, h_pad) weight rows for z (required when z is given)
    """
    weights = list(weights)
    biases = list(biases)

    # Broadcast (vector) z: fold z @ W0_z into the first bias once per call
    # (tiny XLA op, fused under jit) -> the kernel never sees z.
    if z is not None and z.shape[0] == 1:
        biases[0] = biases[0] + jnp.dot(z, w0_z.astype(jnp.float32))
        z = None
    has_z = z is not None

    n_layers = len(weights)
    B, in_features = x.shape
    out_features = weights[-1].shape[1]

    # Batch tile: multiple of 8 sublanes, target >= 2 grid steps (v7x dual-TC),
    # capped at block_b rows (amortizes grid-step overhead, fits VMEM).
    tb = min(block_b, _round_up(max(1, pl.cdiv(B, 2)), SUBLANE))
    grid = (pl.cdiv(B, tb),)

    inputs = [x]
    in_specs = [pl.BlockSpec((tb, in_features), lambda i: (i, 0))]
    if has_z:
        inputs += [z, w0_z]
        in_specs += [
            pl.BlockSpec((tb, z.shape[1]), lambda i: (i, 0)),
            pl.BlockSpec(w0_z.shape, lambda i: (0, 0)),
        ]
    for w, b in zip(weights, biases):
        inputs += [w, b]
        # Constant block index -> weights/biases stay VMEM-resident, no re-DMA.
        in_specs += [
            pl.BlockSpec(w.shape, lambda i: (0, 0)),
            pl.BlockSpec(b.shape, lambda i: (0, 0)),
        ]

    # Explicit VMEM budget: params (double-buffered) + activation tiles + slack,
    # capped at the smallest physical VMEM across chips (v7x: 64 MiB).
    # TODO(synk): for very wide nets, pin weight specs to pipeline_mode=
    # pl.Buffered(1) to drop the redundant param double-buffer on v7x.
    param_arrays = weights + biases + ([w0_z] if has_z else [])
    param_bytes = sum(int(a.size) * a.dtype.itemsize for a in param_arrays)
    widths = [in_features] + [w.shape[1] for w in weights]
    act_bytes = tb * max(widths) * 4
    z_bytes = tb * z.shape[1] * 4 if has_z else 0
    vmem_limit = int(min(2 * param_bytes + 8 * (act_bytes + z_bytes) + (8 << 20),
                         64 << 20))

    kernel = functools.partial(_mlp_kernel, n_layers=n_layers, has_z=has_z)
    return pl.pallas_call(
        kernel,
        out_shape=jax.ShapeDtypeStruct((B, out_features), jnp.float32),
        grid=grid,
        in_specs=in_specs,
        out_specs=pl.BlockSpec((tb, out_features), lambda i: (i, 0)),
        compiler_params=pltpu.CompilerParams(
            dimension_semantics=("parallel",),   # shards batch tiles on v7x
            vmem_limit_bytes=vmem_limit,
        ),
    )(*inputs)


_mlp_forward_jit = jax.jit(mlp_forward, static_argnames=("block_b",))


# ----------------------------------------------------------------------------
# BaseDQN wrapper (param init + layout; forward glue is tiny and jitted)
# ----------------------------------------------------------------------------
class BaseDQNPallas:
    """JAX/Pallas port of BaseDQN's forward pass (batch_norm=False, relu)."""

    def __init__(self, config, without_z=True, seed=0, param_dtype=jnp.float32):
        self.in_size = int(config["obs_size"])
        self.out_size = int(config["act_size"])
        self.z_size = 0 if without_z else int(config["z_size"])
        self.hidden_size = int(config["hidden_size"])
        self.hidden_depth = int(config["hidden_depth"])
        # TODO(synk): batch_norm=True and non-relu activations of LinearBlock
        # are not ported (BaseDQN defaults are batch_norm=False, relu).

        dims = ([self.in_size + self.z_size]
                + [self.hidden_size] * self.hidden_depth
                + [self.out_size])
        # Hidden dims lane-padded to 128 (VMEM-only, lane-dense matmuls); the
        # input K and output N stay unpadded (HBM-facing, keeps DMA lean).
        pdims = [dims[0]] + [_round_up(d, LANE) for d in dims[1:-1]] + [dims[-1]]
        self.dims = dims

        key = jax.random.PRNGKey(seed)
        self.weights, self.biases = [], []      # logical (torch-shaped) f32 params
        kweights, kbiases = [], []              # kernel-layout params
        self.w0_z_p = None
        for i in range(len(dims) - 1):
            key, wk, bk = jax.random.split(key, 3)
            bound = 1.0 / (dims[i] ** 0.5)      # torch nn.Linear default init range
            w = jax.random.uniform(wk, (dims[i], dims[i + 1]), jnp.float32,
                                   -bound, bound)
            b = jax.random.uniform(bk, (1, dims[i + 1]), jnp.float32, -bound, bound)
            self.weights.append(w)
            self.biases.append(b)

            out_p = pdims[i + 1]
            bp = jnp.zeros((1, out_p), jnp.float32).at[:, : dims[i + 1]].set(b)
            kbiases.append(bp)
            if i == 0:
                # Split W0 into obs rows / z rows (z is fused, never concatenated).
                wx = jnp.zeros((self.in_size, out_p), jnp.float32)
                wx = wx.at[:, : dims[1]].set(w[: self.in_size])
                kweights.append(wx.astype(param_dtype))
                if self.z_size > 0:
                    wz = jnp.zeros((self.z_size, out_p), jnp.float32)
                    wz = wz.at[:, : dims[1]].set(w[self.in_size:])
                    self.w0_z_p = wz.astype(param_dtype)
            else:
                wp = jnp.zeros((pdims[i], out_p), jnp.float32)
                wp = wp.at[: dims[i], : dims[i + 1]].set(w)
                kweights.append(wp.astype(param_dtype))
        self.weights_p = tuple(kweights)
        self.biases_p = tuple(kbiases)

        total = sum(w.size for w in self.weights) + sum(b.size for b in self.biases)
        self.total_params = int(total)
        print(f"[ simulator ] total trainable parameters : {self.total_params}")

    def forward(self, state, z=None):
        state = jnp.asarray(state, jnp.float32)
        x = state[None, :] if state.ndim == 1 else state
        if x.shape[-1] > self.in_size:
            # TODO(synk): torch truncates the concatenated [state, z]; we
            # truncate state and z separately (same result for conforming inputs).
            x = x[..., : self.in_size]
        z_arr = None
        if z is not None and self.z_size > 0:
            z_arr = jnp.asarray(z, jnp.float32)
            z_arr = z_arr.reshape(1, -1) if z_arr.ndim == 1 else z_arr
            if z_arr.shape[-1] > self.z_size:
                z_arr = z_arr[..., : self.z_size]
        return _mlp_forward_jit(x, self.weights_p, self.biases_p,
                                z=z_arr, w0_z=self.w0_z_p, block_b=1024)


# ----------------------------------------------------------------------------
# Pure-JAX reference (unpadded params) for correctness checking
# ----------------------------------------------------------------------------
def _ref_forward(x, weights, biases):
    h = x
    for i, (w, b) in enumerate(zip(weights, biases)):
        h = h @ w + b
        if i < len(weights) - 1:
            h = jnp.maximum(h, 0.0)
    return h


if __name__ == "__main__":
    config = {"obs_size": 16, "act_size": 4, "z_size": 8,
              "hidden_size": 32, "hidden_depth": 2}

    def check(name, out, ref, atol, rtol):
        assert out.shape == ref.shape, (name, out.shape, ref.shape)
        err = float(jnp.max(jnp.abs(out - ref)))
        assert jnp.allclose(out, ref, atol=atol, rtol=rtol), \
            f"{name}: max err {err}"

    key = jax.random.PRNGKey(0)
    k1, k2, k3, k4 = jax.random.split(key, 4)

    # --- case 1: without_z, tiny batch (B=2, not a multiple of 8) ------------
    net = BaseDQNPallas(config, without_z=True, seed=0)
    s1 = jax.random.normal(k1, (2, config["obs_size"]), jnp.float32)
    o1 = jax.block_until_ready(net.forward(s1))
    check("small", o1, _ref_forward(s1, net.weights, net.biases), 5e-3, 1e-2)

    # --- case 2: without_z, large batch -> 2 grid steps + ragged last block --
    s2 = jax.random.normal(k2, (600, config["obs_size"]), jnp.float32)
    o2 = jax.block_until_ready(net.forward(s2))
    check("big", o2, _ref_forward(s2, net.weights, net.biases), 5e-3, 1e-2)

    # --- case 3: with z (broadcast vector, folded into bias0) ----------------
    net_z = BaseDQNPallas(config, without_z=False, seed=1)
    s3 = jax.random.normal(k3, (5, config["obs_size"]), jnp.float32)
    zv = jnp.arange(config["z_size"], dtype=jnp.float32) * 0.1
    o3 = jax.block_until_ready(net_z.forward(s3, z=zv))
    x3 = jnp.concatenate(
        [s3, jnp.broadcast_to(zv[None, :], (5, config["z_size"]))], axis=-1)
    check("z-vec", o3, _ref_forward(x3, net_z.weights, net_z.biases), 5e-3, 1e-2)

    # --- case 4: with batched z (per-row z goes through the kernel) ----------
    s4 = jax.random.normal(k4, (6, config["obs_size"]), jnp.float32)
    zb = jax.random.normal(jax.random.PRNGKey(7), (6, config["z_size"]),
                           jnp.float32)
    o4 = jax.block_until_ready(net_z.forward(s4, z=zb))
    x4 = jnp.concatenate([s4, zb], axis=-1)
    check("z-batched", o4, _ref_forward(x4, net_z.weights, net_z.biases),
          5e-3, 1e-2)

    # --- case 5: bf16 parameters (looser tolerance) ---------------------------
    net16 = BaseDQNPallas(config, without_z=True, seed=0,
                          param_dtype=jnp.bfloat16)
    o5 = jax.block_until_ready(net16.forward(s2))
    check("bf16", o5, _ref_forward(s2, net16.weights, net16.biases), 5e-2, 5e-2)

    print("KERNEL_OK")
</pallas_src>

<mosaic_0001>
module attributes {stable_mosaic.version = 11 : i64} {
  func.func @_mlp_kernel(%arg0: i32, %arg1: memref<8x16xf32, #tpu.memory_space<vmem>>, %arg2: memref<16x128xf32, #tpu.memory_space<vmem>>, %arg3: memref<1x128xf32, #tpu.memory_space<vmem>>, %arg4: memref<128x128xf32, #tpu.memory_space<vmem>>, %arg5: memref<1x128xf32, #tpu.memory_space<vmem>>, %arg6: memref<128x4xf32, #tpu.memory_space<vmem>>, %arg7: memref<1x4xf32, #tpu.memory_space<vmem>>, %arg8: memref<8x4xf32, #tpu.memory_space<vmem>>) attributes {dimension_semantics = [#tpu.dimension_semantics<parallel>], iteration_bounds = array<i64: 1>, scalar_prefetch = 0 : i64, scratch_operands = 0 : i64, tpu.core_type = #tpu.core_type<tc>, window_params = [{transform_indices = @transform_0, window_bounds = array<i64: 8, 16>}, {pipeline_mode = #tpu.pipeline_mode<synchronous>, transform_indices = @transform_1, window_bounds = array<i64: 16, 128>}, {pipeline_mode = #tpu.pipeline_mode<synchronous>, transform_indices = @transform_2, window_bounds = array<i64: 1, 128>}, {pipeline_mode = #tpu.pipeline_mode<synchronous>, transform_indices = @transform_3, window_bounds = array<i64: 128, 128>}, {pipeline_mode = #tpu.pipeline_mode<synchronous>, transform_indices = @transform_4, window_bounds = array<i64: 1, 128>}, {pipeline_mode = #tpu.pipeline_mode<synchronous>, transform_indices = @transform_5, window_bounds = array<i64: 128, 4>}, {pipeline_mode = #tpu.pipeline_mode<synchronous>, transform_indices = @transform_6, window_bounds = array<i64: 1, 4>}, {transform_indices = @transform_7, window_bounds = array<i64: 8, 4>}]} {
    %c0 = arith.constant 0 : index
    %c0_0 = arith.constant 0 : index
    %0 = vector.load %arg1[%c0, %c0_0] : memref<8x16xf32, #tpu.memory_space<vmem>>, vector<8x16xf32>
    %c0_1 = arith.constant 0 : index
    %c0_2 = arith.constant 0 : index
    %1 = vector.load %arg2[%c0_1, %c0_2] : memref<16x128xf32, #tpu.memory_space<vmem>>, vector<16x128xf32>
    %c0_3 = arith.constant 0 : index
    %c0_4 = arith.constant 0 : index
    %2 = vector.load %arg3[%c0_3, %c0_4] : memref<1x128xf32, #tpu.memory_space<vmem>>, vector<1x128xf32>
    %cst = arith.constant dense<0.000000e+00> : vector<8x128xf32>
    %3 = tpu.matmul %0, %1, %cst {dimension_numbers = #tpu.dot_dimension_numbers<[1], [0], [0], [1], [0, 0, 1, 1], [], []>} : vector<8x16xf32>, vector<16x128xf32>, vector<8x128xf32> -> vector<8x128xf32>
    %4 = vector.broadcast %2 : vector<1x128xf32> to vector<8x128xf32>
    %5 = arith.addf %3, %4 : vector<8x128xf32>
    %cst_5 = arith.constant 0.000000e+00 : f32
    %6 = vector.broadcast %cst_5 : f32 to vector<8x128xf32>
    %7 = arith.maximumf %5, %6 : vector<8x128xf32>
    %c0_6 = arith.constant 0 : index
    %c0_7 = arith.constant 0 : index
    %8 = vector.load %arg4[%c0_6, %c0_7] : memref<128x128xf32, #tpu.memory_space<vmem>>, vector<128x128xf32>
    %c0_8 = arith.constant 0 : index
    %c0_9 = arith.constant 0 : index
    %9 = vector.load %arg5[%c0_8, %c0_9] : memref<1x128xf32, #tpu.memory_space<vmem>>, vector<1x128xf32>
    %cst_10 = arith.constant dense<0.000000e+00> : vector<8x128xf32>
    %10 = tpu.matmul %7, %8, %cst_10 {dimension_numbers = #tpu.dot_dimension_numbers<[1], [0], [0], [1], [0, 0, 1, 1], [], []>} : vector<8x128xf32>, vector<128x128xf32>, vector<8x128xf32> -> vector<8x128xf32>
    %11 = vector.broadcast %9 : vector<1x128xf32> to vector<8x128xf32>
    %12 = arith.addf %10, %11 : vector<8x128xf32>
    %cst_11 = arith.constant 0.000000e+00 : f32
    %13 = vector.broadcast %cst_11 : f32 to vector<8x128xf32>
    %14 = arith.maximumf %12, %13 : vector<8x128xf32>
    %c0_12 = arith.constant 0 : index
    %c0_13 = arith.constant 0 : index
    %15 = vector.load %arg6[%c0_12, %c0_13] : memref<128x4xf32, #tpu.memory_space<vmem>>, vector<128x4xf32>
    %c0_14 = arith.constant 0 : index
    %c0_15 = arith.constant 0 : index
    %16 = vector.load %arg7[%c0_14, %c0_15] : memref<1x4xf32, #tpu.memory_space<vmem>>, vector<1x4xf32>
    %cst_16 = arith.constant dense<0.000000e+00> : vector<8x4xf32>
    %17 = tpu.matmul %14, %15, %cst_16 {dimension_numbers = #tpu.dot_dimension_numbers<[1], [0], [0], [1], [0, 0, 1, 1], [], []>} : vector<8x128xf32>, vector<128x4xf32>, vector<8x4xf32> -> vector<8x4xf32>
    %18 = vector.broadcast %16 : vector<1x4xf32> to vector<8x4xf32>
    %19 = arith.addf %17, %18 : vector<8x4xf32>
    %c0_17 = arith.constant 0 : index
    %c0_18 = arith.constant 0 : index
    %20 = vector.load %arg8[%c0_17, %c0_18] : memref<8x4xf32, #tpu.memory_space<vmem>>, vector<8x4xf32>
    tpu.vector_store %arg8[%c0_17, %c0_18], %19 {strides = array<i32>} : memref<8x4xf32, #tpu.memory_space<vmem>>, vector<8x4xf32>,
    return
  }
  func.func @transform_0(%arg0: i32) -> (i32, i32) {
    %c0_i32 = arith.constant 0 : i32
    %c0_i32_0 = arith.constant 0 : i32
    return %arg0, %c0_i32 : i32, i32
  }
  func.func @transform_1(%arg0: i32) -> (i32, i32) {
    %c0_i32 = arith.constant 0 : i32
    %c0_i32_0 = arith.constant 0 : i32
    %c0_i32_1 = arith.constant 0 : i32
    return %c0_i32, %c0_i32_0 : i32, i32
  }
  func.func @transform_2(%arg0: i32) -> (i32, i32) {
    %c0_i32 = arith.constant 0 : i32
    %c0_i32_0 = arith.constant 0 : i32
    %c0_i32_1 = arith.constant 0 : i32
    return %c0_i32, %c0_i32_0 : i32, i32
  }
  func.func @transform_3(%arg0: i32) -> (i32, i32) {
    %c0_i32 = arith.constant 0 : i32
    %c0_i32_0 = arith.constant 0 : i32
    %c0_i32_1 = arith.constant 0 : i32
    return %c0_i32, %c0_i32_0 : i32, i32
  }
  func.func @transform_4(%arg0: i32) -> (i32, i32) {
    %c0_i32 = arith.constant 0 : i32
    %c0_i32_0 = arith.constant 0 : i32
    %c0_i32_1 = arith.constant 0 : i32
    return %c0_i32, %c0_i32_0 : i32, i32
  }
  func.func @transform_5(%arg0: i32) -> (i32, i32) {
    %c0_i32 = arith.constant 0 : i32
    %c0_i32_0 = arith.constant 0 : i32
    %c0_i32_1 = arith.constant 0 : i32
    return %c0_i32, %c0_i32_0 : i32, i32
  }
  func.func @transform_6(%arg0: i32) -> (i32, i32) {
    %c0_i32 = arith.constant 0 : i32
    %c0_i32_0 = arith.constant 0 : i32
    %c0_i32_1 = arith.constant 0 : i32
    return %c0_i32, %c0_i32_0 : i32, i32
  }
  func.func @transform_7(%arg0: i32) -> (i32, i32) {
    %c0_i32 = arith.constant 0 : i32
    %c0_i32_0 = arith.constant 0 : i32
    return %arg0, %c0_i32 : i32, i32
  }
}

</mosaic_0001>

<bundles_post_ra>
// kernel: mlp_forward.1
= control target key start
LH: loop header
LB: loop body
LE: loop exit
PB: predicated region body
PF: predicated region fallthrough
CT: control target
= control target key end

     0   :  { %12 = vsyncpa [#allocation3], 0  ;;  %s759_s0 = inlined_call_operand.vmem [shape: f32[2,16], index: 0, kind: input, shape index: {}]   ;;  %s760_s1 = inlined_call_operand.hbm [shape: f32[16,128], index: 1, kind: input, shape index: {}]   ;;  %s761_s2 = inlined_call_operand.vmem [shape: f32[1,128], index: 2, kind: input, shape index: {}]   ;;  %s762_s3 = inlined_call_operand.vmem [shape: f32[128,128], index: 3, kind: input, shape index: {}]   ;;  %s763_s4 = inlined_call_operand.vmem [shape: f32[1,128], index: 4, kind: input, shape index: {}]   ;;  %s764_s5 = inlined_call_operand.vmem [shape: f32[128,4], index: 5, kind: input, shape index: {}]   ;;  %s765_s6 = inlined_call_operand.vmem [shape: f32[1,4], index: 6, kind: input, shape index: {}]   ;;  %s766_s7 = inlined_call_operand.hbm [shape: f32[2,4], index: 7, kind: output, shape index: {}]  }
   0x1   :  { %13 = vsyncpa [#allocation4], 0  ;;  %s558_s24 = smov [#allocation2]   ;;  %s510_s28 = scalar_lea.hbm %s760_s1, 256 }
   0x2   :  { %s21_s25 = sshll.u32 %s558_s24, 4  ;;  %p511_p0 = scmp.ne.s32.totalorder %s760_s1, %s510_s28  ;;  %s22_s25 = int_to_ptr.vmem [resolvable:$true] %s21_s25 }
   0x3   :  { %p514_p1 = scmp.lt.u32.totalorder %s510_s28, %s760_s1 }
   0x5   :  { %p516_p2 = pnand %p514_p1, %p511_p0 }
   0x7   :  { %519 = shalt.err (!%p516_p2)
}
   0x8   :  { %s520_s10 = scalar_lea.vmem %s22_s25, 256  ;;  %p525_p4 = scmp.lt.s32.totalorder %s22_s25, %s22_s25 }
   0x9   :  { %p521_p3 = scmp.ne.s32.totalorder %s22_s25, %s520_s10  ;;  %p526_p5 = scmp.lt.s32.totalorder %s520_s10, %s520_s10 }
   0xb   :  { %p527_p6 = por %p526_p5, %p525_p4 }
   0xd   :  { %p528_p7 = pnand %p527_p6, %p521_p3 }
   0xf   :  { %531 = shalt.err (!%p528_p7)
}
  0x10   :  { %s559_s11 = smov 128   ;;  %s560_s12 = smov 8  }
  0x11   :  { %27 = dma.hbm_to_vmem [thread:$0]  %s760_s1, 256, %s22_s25, [#allocation3], %s559_s11, %s559_s11, %s560_s12  }
  0x12   :  { %554 = dma.done.wait [#allocation3], 256  }
  0x13   :  { %555 = vsyncadd [#allocation3], 4294967040  ;;  %v561_v0 = vmov 0.0|0.0   ;;  %vm562_vm0 = vmmov 0   ;;  %v563_v1 = vmov 0.0   ;;  %v42_v2 = vld [vmem:[#allocation2] sm:$0xff] }
  0x14   :  { %450 = vmatprep.subr.bf16.mxu0 %v561_v0  ;;  %377 = vmatprep.mubr.msk.f32.mxu0 %vm562_vm0, %v563_v1  ;;  %v43_v3 = vld [vmem:[#allocation2 + $0x8] sm:$0xff]  ;;  %v126_v5 = vld [vmem:[%s762_s3] sm:$0xff]  ;;  %v128_v7 = vld [vmem:[%s762_s3 + $0x10] sm:$0xff]  ;;  %vm51_vm1 = vcmask 130048   ;;  %vm313_vm2 = vcmask 31744  }
  0x15   :  { %453 = vmatprep.subr.bf16.mxu1 %v561_v0  ;;  %412 = vmatprep.mubr.msk.f32.mxu1 %vm562_vm0, %v563_v1  ;;  %v451_v4 = vpack.c.bf16 %v43_v3, %v42_v2  ;;  %v127_v6 = vld [vmem:[%s762_s3 + $0x8] sm:$0xff]  ;;  %v129_v9 = vld [vmem:[%s762_s3 + $0x18] sm:$0xff]  ;;  %v41_v10 = vld [vmem:[%s759_s0] sm:$0xff] }
  0x16   :  { %v454_v8 = vpack.c.bf16 %v127_v6, %v126_v5  ;;  %v457_v11 = vpack.c.bf16 %v129_v9, %v128_v7  ;;  %v130_v12 = vld [vmem:[%s762_s3 + $0x20] sm:$0xff]  ;;  %v131_v13 = vld [vmem:[%s762_s3 + $0x28] sm:$0xff]  ;;  %v132_v15 = vld [vmem:[%s762_s3 + $0x30] sm:$0xff] }
  0x17   :  { %452 = vmatpush3.bf16.msra.mxu0 %v451_v4  ;;  %v460_v14 = vpack.c.bf16 %v131_v13, %v130_v12  ;;  %v133_v16 = vld [vmem:[%s762_s3 + $0x38] sm:$0xff]  ;;  %v134_v18 = vld [vmem:[%s762_s3 + $0x40] sm:$0xff]  ;;  %v135_v19 = vld [vmem:[%s762_s3 + $0x48] sm:$0xff] }
  0x18   :  { %455 = vmatpush3.bf16.msra.mxu1 %v454_v8  ;;  %477 = vmatprep.subr.bf16.mxu0 %v561_v0  ;;  %v463_v17 = vpack.c.bf16 %v133_v16, %v132_v15  ;;  %v466_v20 = vpack.c.bf16 %v135_v19, %v134_v18  ;;  %v136_v21 = vld [vmem:[%s762_s3 + $0x50] sm:$0xff]  ;;  %v137_v22 = vld [vmem:[%s762_s3 + $0x58] sm:$0xff]  ;;  %v138_v24 = vld [vmem:[%s762_s3 + $0x60] sm:$0xff] }
  0x19   :  { %456 = vmatprep.subr.bf16.mxu1 %v561_v0  ;;  %v469_v23 = vpack.c.bf16 %v137_v22, %v136_v21  ;;  %v139_v25 = vld [vmem:[%s762_s3 + $0x68] sm:$0xff]  ;;  %v140_v27 = vld [vmem:[%s762_s3 + $0x70] sm:$0xff]  ;;  %v141_v28 = vld [vmem:[%s762_s3 + $0x78] sm:$0xff] }
  0x1a   :  { %378 = vmatmul.mubr.msk.f32.vlgmr.msra.gmra.mrb[0].mxu0 %vm51_vm1, %v41_v10  ;;  %v472_v26 = vpack.c.bf16 %v139_v25, %v138_v24  ;;  %v475_v29 = vpack.c.bf16 %v141_v28, %v140_v27  ;;  %v220_v30 = vld [vmem:[%s764_s5] sm:$0xff]  ;;  %v221_v31 = vld [vmem:[%s764_s5 + $0x8] sm:$0xff]  ;;  %v222_v32 = vld [vmem:[%s764_s5 + $0x10] sm:$0xff] }
  0x1b   :  { %447 = vmatprep.mubr.msk.f32.mxu0 %vm562_vm0, %v563_v1  ;;  %v478_v33 = vpack.c.bf16 %v221_v31, %v220_v30  ;;  %v223_v34 = vld [vmem:[%s764_s5 + $0x18] sm:$0xff]  ;;  %v224_v36 = vld [vmem:[%s764_s5 + $0x20] sm:$0xff]  ;;  %v225_v37 = vld [vmem:[%s764_s5 + $0x28] sm:$0xff] }
  0x1c   :  { %458 = vmatpush3.bf16.msra.mxu1 %v457_v11  ;;  %v481_v35 = vpack.c.bf16 %v223_v34, %v222_v32  ;;  %v484_v38 = vpack.c.bf16 %v225_v37, %v224_v36  ;;  %v226_v39 = vld [vmem:[%s764_s5 + $0x30] sm:$0xff]  ;;  %v227_v40 = vld [vmem:[%s764_s5 + $0x38] sm:$0xff]  ;;  %v228_v42 = vld [vmem:[%s764_s5 + $0x40] sm:$0xff] }
  0x1d   :  { %459 = vmatprep.subr.bf16.mxu1 %v561_v0  ;;  %479 = vmatpush3.bf16.msra.mxu0 %v478_v33  ;;  %v487_v41 = vpack.c.bf16 %v227_v40, %v226_v39  ;;  %v229_v43 = vld [vmem:[%s764_s5 + $0x48] sm:$0xff]  ;;  %v230_v45 = vld [vmem:[%s764_s5 + $0x50] sm:$0xff]  ;;  %v231_v46 = vld [vmem:[%s764_s5 + $0x58] sm:$0xff] }
  0x1e   :  { %480 = vmatprep.subr.bf16.mxu0 %v561_v0  ;;  %v490_v44 = vpack.c.bf16 %v229_v43, %v228_v42  ;;  %v493_v47 = vpack.c.bf16 %v231_v46, %v230_v45  ;;  %v232_v48 = vld [vmem:[%s764_s5 + $0x60] sm:$0xff]  ;;  %v233_v49 = vld [vmem:[%s764_s5 + $0x68] sm:$0xff]  ;;  %v234_v56 = vld [vmem:[%s764_s5 + $0x70] sm:$0xff] }
  0x1f   :  { %v496_v50 = vpack.c.bf16 %v233_v49, %v232_v48  ;;  %v332_v51 = vld [vmem:[%s761_s2] ss:$0 sm:$0xff]  ;;  %v235_v57 = vld [vmem:[%s764_s5 + $0x78] sm:$0xff] }
  0x20   :  { %461 = vmatpush3.bf16.msra.mxu1 %v460_v14  ;;  %v499_v58 = vpack.c.bf16 %v235_v57, %v234_v56  ;;  %v334_v59 = vld [vmem:[%s763_s4] ss:$0 sm:$0xff] }
  0x21   :  { %462 = vmatprep.subr.bf16.mxu1 %v561_v0  ;;  %482 = vmatpush3.bf16.msra.mxu0 %v481_v35 }
  0x22   :  { %483 = vmatprep.subr.bf16.mxu0 %v561_v0 }
  0x24   :  { %464 = vmatpush3.bf16.msra.mxu1 %v463_v17 }
  0x25   :  { %465 = vmatprep.subr.bf16.mxu1 %v561_v0  ;;  %485 = vmatpush3.bf16.msra.mxu0 %v484_v38 }
  0x26   :  { %486 = vmatprep.subr.bf16.mxu0 %v561_v0 }
  0x28   :  { %467 = vmatpush3.bf16.msra.mxu1 %v466_v20 }
  0x29   :  { %468 = vmatprep.subr.bf16.mxu1 %v561_v0  ;;  %488 = vmatpush3.bf16.msra.mxu0 %v487_v41 }
  0x2a   :  { %489 = vmatprep.subr.bf16.mxu0 %v561_v0 }
  0x2c   :  { %470 = vmatpush3.bf16.msra.mxu1 %v469_v23 }
  0x2d   :  { %471 = vmatprep.subr.bf16.mxu1 %v561_v0  ;;  %491 = vmatpush3.bf16.msra.mxu0 %v490_v44 }
  0x2e   :  { %492 = vmatprep.subr.bf16.mxu0 %v561_v0 }
  0x30   :  { %473 = vmatpush3.bf16.msra.mxu1 %v472_v26 }
  0x31   :  { %474 = vmatprep.subr.bf16.mxu1 %v561_v0  ;;  %494 = vmatpush3.bf16.msra.mxu0 %v493_v47 }
  0x32   :  { %495 = vmatprep.subr.bf16.mxu0 %v561_v0 }
  0x34   :  { %476 = vmatpush3.bf16.msra.mxu1 %v475_v29 }
  0x35   :  { %497 = vmatpush3.bf16.msra.mxu0 %v496_v50 }
  0x36   :  { %498 = vmatprep.subr.bf16.mxu0 %v561_v0  ;;  %v335_v0 = vld [vmem:[%s765_s6] ss:$0 sm:$0xff] }
  0x39   :  { %500 = vmatpush3.bf16.msra.mxu0 %v499_v58 }
  0xed   :  { %v121_v52 = vpop.f32.mrb[0].mxu0 }
  0xee   :  { %v122_v53 = vadd.f32 %v332_v51, %v121_v52  ;;  %v379_v54 = vpop.f32.mrb[1].mxu0 }
  0xf0   :  { %v125_v55 = vmax.f32 %v122_v53, 0.0 }
  0xf2   :  { %413 = vmatmul.mubr.f32.vlgmr.msra.gmra.mrb[0].mxu1 %v125_v55 }
 0x1c5   :  { %v215_v60 = vpop.f32.mrb[0].mxu1 }
 0x1c6   :  { %v216_v61 = vadd.f32 %v334_v59, %v215_v60  ;;  %v414_v62 = vpop.f32.mrb[1].mxu1 }
 0x1c8   :  { %v219_v63 = vmax.f32 %v216_v61, 0.0 }
 0x1ca   :  { %448 = vmatmul.mubr.f32.vlgmr.msra.gmra.mrb[2].mxu0 %v219_v63 }
 0x29d   :  { %v309_v1 = vpop.f32.mrb[2].mxu0 }
 0x29e   :  { %v310_v2 = vadd.f32 %v335_v0, %v309_v1  ;;  %v449_v3 = vpop.f32.mrb[3].mxu0 }
 0x2a0   :  { %314 = vst.msk [vmem:[#allocation5] sm:$0xff] %vm313_vm2, %v310_v2 }
 0x2a1   :  { %319 = vsyncadd [#allocation4], 96  ;;  %s564_s5 = smov [#allocation5]  }
 0x2a2   :  { %s320_s9 = sshll.u32 %s564_s5, 4  ;;  %s321_s9 = int_to_ptr.vmem [resolvable:$true] %s320_s9 }
 0x2a3   :  { %s532_s10 = scalar_lea.vmem %s321_s9, 32  ;;  %s536_s4 = scalar_lea.vmem %s321_s9, 128 }
 0x2a4   :  { %p533_p8 = scmp.ne.s32.totalorder %s321_s9, %s532_s10  ;;  %p537_p9 = scmp.lt.s32.totalorder %s321_s9, %s321_s9 }
 0x2a5   :  { %p538_p10 = scmp.lt.s32.totalorder %s536_s4, %s532_s10 }
 0x2a7   :  { %p539_p11 = por %p538_p10, %p537_p9 }
 0x2a9   :  { %p540_p12 = pnand %p539_p11, %p533_p8 }
 0x2ab   :  { %543 = shalt.err (!%p540_p12)
}
 0x2ac   :  { %s544_s6 = scalar_lea.hbm %s766_s7, 32 }
 0x2ad   :  { %p545_p13 = scmp.ne.s32.totalorder %s766_s7, %s544_s6  ;;  %p548_p0 = scmp.lt.u32.totalorder %s544_s6, %s766_s7 }
 0x2af   :  { %p550_p1 = pnand %p548_p0, %p545_p13 }
 0x2b1   :  { %553 = shalt.err (!%p550_p1)
}
 0x2b2   :  { %s565_s1 = smov 32   ;;  %s566_s17 = smov 2  }
 0x2b3   :  { %326 = dma.vmem_to_hbm [thread:$0]  %s321_s9, 32, %s766_s7, [#allocation4], %s565_s1, %s565_s1, %s566_s17  }
 0x2b4   :  { %556 = dma.done.wait [#allocation4], 128  }
 0x2b5   :  { %557 = vsyncadd [#allocation4], 4294967168 }
 0x2b6   :  { %330 = vsyncpa [#allocation3], 1 }
 0x2b7   :  { %331 = vsyncpa [#allocation4], 1 }

</bundles_post_ra>
